<compile_context>
chip_gen: v6e
topology: v6e:2x2x1
jax: 0.10.0
libtpu: 0.0.40
codegen_flags: <defaults>
</compile_context>

<pallas_src>
import functools

import jax
import jax.numpy as jnp
from jax.experimental import pallas as pl
from jax.experimental.pallas import tpu as pltpu


def _log_sigmoid(x):
    # numerically stable log(sigmoid(x)) = min(x, 0) - log1p(exp(-|x|))
    return jnp.minimum(x, 0.0) - jnp.log1p(jnp.exp(-jnp.abs(x)))


def _skipgram_kernel(K, tile_B, chunk,
                     tgt_ref, ctx_ref, negf_ref,      # scalar-prefetch ids (SMEM)
                     in_w_ref, out_w_ref,             # weight tables (HBM, pl.ANY)
                     out_ref,                         # (1, 8, 128) per-block sum tile
                     v_buf, u_buf, neg_buf, sems):    # VMEM scratch + DMA sems
    g = pl.program_id(0)
    base = g * tile_B
    nbase = g * (tile_B * K)

    # ---- issue all row-gather DMAs (HBM -> VMEM scratch) --------------------
    # The DMA engine drains these concurrently with this issue loop, so by the
    # time the last descriptor is pushed most rows have already landed.
    @pl.loop(0, tile_B)
    def _(i):
        t = tgt_ref[base + i]
        pltpu.make_async_copy(in_w_ref.at[pl.ds(t, 1)],
                              v_buf.at[pl.ds(i, 1)], sems.at[0]).start()
        c = ctx_ref[base + i]
        pltpu.make_async_copy(out_w_ref.at[pl.ds(c, 1)],
                              u_buf.at[pl.ds(i, 1)], sems.at[1]).start()
        for k in range(K):                     # static unroll, K is small
            n = negf_ref[nbase + i * K + k]
            pltpu.make_async_copy(out_w_ref.at[pl.ds(n, 1)],
                                  neg_buf.at[pl.ds(k * tile_B + i, 1)],
                                  sems.at[2]).start()

    n_chunks = tile_B // chunk
    acc = jnp.zeros((1, 1), jnp.float32)       # per-block sum of loss terms

    # ---- positive phase ------------------------------------------------------
    # One aggregate wait per buffer: DMA sems count bytes, so a wait descriptor
    # shaped like the whole (tile_B, D) buffer drains all tile_B row copies.
    # The negative rows keep streaming while the positive terms are computed.
    pltpu.make_async_copy(v_buf, v_buf, sems.at[0]).wait()
    pltpu.make_async_copy(u_buf, u_buf, sems.at[1]).wait()

    for c in range(n_chunks):                  # static unroll; chunk bounds vregs
        r0 = c * chunk
        v = v_buf[pl.ds(r0, chunk), :].astype(jnp.float32)
        u = u_buf[pl.ds(r0, chunk), :].astype(jnp.float32)   # u dies after this
        pos = _log_sigmoid(jnp.sum(u * v, axis=1, keepdims=True))   # (chunk, 1)
        acc = acc + jnp.sum(pos, axis=0, keepdims=True)

    # ---- negative phase ------------------------------------------------------
    # Single aggregate wait for all tile_B*K negative row copies.
    pltpu.make_async_copy(neg_buf, neg_buf, sems.at[2]).wait()

    for c in range(n_chunks):
        r0 = c * chunk
        v = v_buf[pl.ds(r0, chunk), :].astype(jnp.float32)
        neg_score = jnp.zeros((chunk, 1), jnp.float32)
        for k in range(K):                     # one (chunk, D) slab live at a time
            slab = neg_buf[pl.ds(k * tile_B + r0, chunk), :].astype(jnp.float32)
            neg_score = neg_score + jnp.sum(slab * v, axis=1, keepdims=True)
        acc = acc + jnp.sum(_log_sigmoid(-neg_score), axis=0, keepdims=True)

    # Lane-dense, (8,128)-aligned output tile holding the per-block scalar.
    out_ref[...] = jnp.broadcast_to(acc.reshape(1, 1, 1), (1, 8, 128))


def _pick_tile_b(B, K, D, itemsize, scratch_budget=16 * 2**20):
    """Largest row tile that divides B, keeps the (2+K)-row VMEM scratch within
    budget, and leaves >= 2 grid blocks when B >= 256 (v7x has 2 TensorCores)."""
    for t in (256, 128, 64, 32, 16, 8):
        if B % t:
            continue
        if B >= 256 and B // t < 2:
            continue
        if t * (2 + K) * D * itemsize > scratch_budget:
            continue
        return t
    return B          # tiny / awkward batch sizes: one block covers everything


def _pick_chunk(tile_B, D):
    """Rows per compute sub-tile: keep one (chunk, D) f32 slab at <= ~24 vregs
    so v + one negative slab + the (chunk, 1) row scores fit the vreg file."""
    max_rows = max(8, (24 * 1024) // max(D, 1))
    c = tile_B
    while c > max_rows and c % 2 == 0:
        c //= 2
    return c


def skipgram_forward(in_weight, out_weight, target, context, neg):
    """loss = -mean(logsigmoid(u.v) + logsigmoid(-sum_k u_hat_k.v))"""
    (B,) = target.shape
    _, K = neg.shape
    _, D = in_weight.shape
    itemsize = jnp.dtype(in_weight.dtype).itemsize

    tile_B = _pick_tile_b(B, K, D, itemsize)
    num_blocks = B // tile_B
    chunk = _pick_chunk(tile_B, D)

    scratch_bytes = tile_B * (2 + K) * D * itemsize
    vmem_limit = int(min(48 * 2**20, max(32 * 2**20, 2 * scratch_bytes + 8 * 2**20)))

    target = target.astype(jnp.int32)
    context = context.astype(jnp.int32)
    neg_flat = neg.astype(jnp.int32).reshape(-1)     # (B*K,) row-major

    kernel = functools.partial(_skipgram_kernel, K, tile_B, chunk)
    block_tiles = pl.pallas_call(
        kernel,
        out_shape=jax.ShapeDtypeStruct((num_blocks, 8, 128), jnp.float32),
        grid_spec=pltpu.PrefetchScalarGridSpec(
            num_scalar_prefetch=3,
            grid=(num_blocks,),
            in_specs=[
                pl.BlockSpec(memory_space=pl.ANY),   # input_emb weight (HBM)
                pl.BlockSpec(memory_space=pl.ANY),   # output_emb weight (HBM)
            ],
            out_specs=pl.BlockSpec((1, 8, 128),
                                   lambda g, tgt, ctx, ngf: (g, 0, 0)),
            scratch_shapes=[
                pltpu.VMEM((tile_B, D), in_weight.dtype),        # v rows
                pltpu.VMEM((tile_B, D), out_weight.dtype),       # u rows
                pltpu.VMEM((tile_B * K, D), out_weight.dtype),   # neg rows (K slabs)
                pltpu.SemaphoreType.DMA((3,)),
            ],
        ),
        compiler_params=pltpu.CompilerParams(
            dimension_semantics=("parallel",),
            vmem_limit_bytes=vmem_limit),
    )(target, context, neg_flat, in_weight, out_weight)

    # every element of a block's (8,128) tile equals that block's partial sum
    return -jnp.sum(block_tiles[:, 0, 0]) / B


def skipgram_forward_ref(in_weight, out_weight, target, context, neg):
    # pure-JAX reference mirroring the PyTorch forward exactly
    v = in_weight[target]                                # (B, D)
    u = out_weight[context]                              # (B, D)
    pos = _log_sigmoid(jnp.sum(u * v, axis=1))           # (B,)
    u_hat = out_weight[neg]                              # (B, K, D)
    neg_vals = jnp.einsum('bkd,bd->bk', u_hat, v)        # (B, K)
    negt = _log_sigmoid(-jnp.sum(neg_vals, axis=1))      # (B,)
    return -jnp.mean(pos + negt)


if __name__ == "__main__":
    def run_case(vocab, D, B, K, key, zero_out):
        k_in, k_out, k_t, k_c, k_n = jax.random.split(key, 5)
        initrange = (2.0 / (vocab + D)) ** 0.5
        in_w = jax.random.uniform(k_in, (vocab, D), jnp.float32,
                                  -initrange, initrange)
        if zero_out:   # module default: output_emb initialized to zero
            out_w = jnp.zeros((vocab, D), jnp.float32)
        else:
            out_w = jax.random.uniform(k_out, (vocab, D), jnp.float32,
                                       -initrange, initrange)
        target = jax.random.randint(k_t, (B,), 0, vocab, dtype=jnp.int32)
        context = jax.random.randint(k_c, (B,), 0, vocab, dtype=jnp.int32)
        neg = jax.random.randint(k_n, (B, K), 0, vocab, dtype=jnp.int32)

        loss = jax.block_until_ready(
            skipgram_forward(in_w, out_w, target, context, neg))
        ref = jax.block_until_ready(
            skipgram_forward_ref(in_w, out_w, target, context, neg))
        assert jnp.allclose(loss, ref, rtol=1e-4, atol=1e-5), (loss, ref)

    key = jax.random.PRNGKey(0)
    k1, k2, k3 = jax.random.split(key, 3)

    # small shapes, module-default init (output_emb = 0): single grid block
    run_case(vocab=64, D=32, B=8, K=4, key=k1, zero_out=True)
    # small shapes, non-trivial output weights so the math is exercised
    run_case(vocab=64, D=32, B=8, K=4, key=k2, zero_out=False)
    # larger batch: exercises the tiled grid (tile_B=128, 2 blocks, parallel axis)
    run_case(vocab=512, D=128, B=256, K=8, key=k3, zero_out=False)

    print("KERNEL_OK")
</pallas_src>

<mosaic_0001>
module attributes {stable_mosaic.version = 11 : i64} {
  func.func @_skipgram_kernel(%arg0: i32, %arg1: memref<8xi32, #tpu.memory_space<smem>>, %arg2: memref<8xi32, #tpu.memory_space<smem>>, %arg3: memref<32xi32, #tpu.memory_space<smem>>, %arg4: memref<64x32xf32, #tpu.memory_space<any>>, %arg5: memref<64x32xf32, #tpu.memory_space<any>>, %arg6: memref<1x8x128xf32, #tpu.memory_space<vmem>>, %arg7: memref<8x32xf32, #tpu.memory_space<vmem>>, %arg8: memref<8x32xf32, #tpu.memory_space<vmem>>, %arg9: memref<32x32xf32, #tpu.memory_space<vmem>>, %arg10: memref<3x!tpu.dma_semaphore, #tpu.memory_space<semaphore_mem>>) attributes {dimension_semantics = [#tpu.dimension_semantics<parallel>], iteration_bounds = array<i64: 1>, scalar_prefetch = 3 : i64, scratch_operands = 4 : i64, tpu.core_type = #tpu.core_type<tc>, window_params = [{}, {}, {transform_indices = @transform_2, window_bounds = array<i64: 1, 8, 128>}]} {
    %c8_i32 = arith.constant 8 : i32
    %0 = arith.muli %arg0, %c8_i32 : i32
    %c32_i32 = arith.constant 32 : i32
    %1 = arith.muli %arg0, %c32_i32 : i32
    %c0_i32 = arith.constant 0 : i32
    %c8_i32_0 = arith.constant 8 : i32
    %2 = arith.addi %c0_i32, %c8_i32_0 : i32
    %c1_i32 = arith.constant 1 : i32
    scf.for %arg11 = %c0_i32 to %2 step %c1_i32  : i32 {
      %c1_i32_30 = arith.constant 1 : i32
      %65 = arith.muli %arg11, %c1_i32_30 : i32
      %c0_i32_31 = arith.constant 0 : i32
      %66 = arith.addi %c0_i32_31, %65 : i32
      %67 = arith.addi %0, %66 : i32
      %68 = arith.index_cast %67 : i32 to index
      %69 = memref.load %arg1[%68] : memref<8xi32, #tpu.memory_space<smem>>
      %c0_i32_32 = arith.constant 0 : i32
      %c0_i32_33 = arith.constant 0 : i32
      %70 = tpu.memref_slice %arg4[%69, %c0_i32_33] : memref<64x32xf32, #tpu.memory_space<any>> -> memref<1x32xf32, #tpu.memory_space<any>>
      %c0_i32_34 = arith.constant 0 : i32
      %71 = tpu.memref_slice %arg7[%66, %c0_i32_34] : memref<8x32xf32, #tpu.memory_space<vmem>> -> memref<1x32xf32, #tpu.memory_space<vmem>>
      %72 = tpu.memref_slice %arg10[%c0_i32_32] : memref<3x!tpu.dma_semaphore, #tpu.memory_space<semaphore_mem>> -> memref<1x!tpu.dma_semaphore, #tpu.memory_space<semaphore_mem>>
      %73 = tpu.memref_squeeze %72 : memref<1x!tpu.dma_semaphore, #tpu.memory_space<semaphore_mem>> -> memref<!tpu.dma_semaphore, #tpu.memory_space<semaphore_mem>>
      tpu.enqueue_dma source(%70 : memref<1x32xf32, #tpu.memory_space<any>>) target(%71 : memref<1x32xf32, #tpu.memory_space<vmem>>) target_semaphore(%73 : memref<!tpu.dma_semaphore, #tpu.memory_space<semaphore_mem>>)
      %74 = arith.addi %0, %66 : i32
      %75 = arith.index_cast %74 : i32 to index
      %76 = memref.load %arg2[%75] : memref<8xi32, #tpu.memory_space<smem>>
      %c1_i32_35 = arith.constant 1 : i32
      %c0_i32_36 = arith.constant 0 : i32
      %77 = tpu.memref_slice %arg5[%76, %c0_i32_36] : memref<64x32xf32, #tpu.memory_space<any>> -> memref<1x32xf32, #tpu.memory_space<any>>
      %c0_i32_37 = arith.constant 0 : i32
      %78 = tpu.memref_slice %arg8[%66, %c0_i32_37] : memref<8x32xf32, #tpu.memory_space<vmem>> -> memref<1x32xf32, #tpu.memory_space<vmem>>
      %79 = tpu.memref_slice %arg10[%c1_i32_35] : memref<3x!tpu.dma_semaphore, #tpu.memory_space<semaphore_mem>> -> memref<1x!tpu.dma_semaphore, #tpu.memory_space<semaphore_mem>>
      %80 = tpu.memref_squeeze %79 : memref<1x!tpu.dma_semaphore, #tpu.memory_space<semaphore_mem>> -> memref<!tpu.dma_semaphore, #tpu.memory_space<semaphore_mem>>
      tpu.enqueue_dma source(%77 : memref<1x32xf32, #tpu.memory_space<any>>) target(%78 : memref<1x32xf32, #tpu.memory_space<vmem>>) target_semaphore(%80 : memref<!tpu.dma_semaphore, #tpu.memory_space<semaphore_mem>>)
      %c4_i32 = arith.constant 4 : i32
      %81 = arith.muli %66, %c4_i32 : i32
      %82 = arith.addi %1, %81 : i32
      %c0_i32_38 = arith.constant 0 : i32
      %83 = arith.addi %82, %c0_i32_38 : i32
      %84 = arith.index_cast %83 : i32 to index
      %85 = memref.load %arg3[%84] : memref<32xi32, #tpu.memory_space<smem>>
      %c0_i32_39 = arith.constant 0 : i32
      %86 = arith.addi %c0_i32_39, %66 : i32
      %c2_i32_40 = arith.constant 2 : i32
      %c0_i32_41 = arith.constant 0 : i32
      %87 = tpu.memref_slice %arg5[%85, %c0_i32_41] : memref<64x32xf32, #tpu.memory_space<any>> -> memref<1x32xf32, #tpu.memory_space<any>>
      %c0_i32_42 = arith.constant 0 : i32
      %88 = tpu.memref_slice %arg9[%86, %c0_i32_42] : memref<32x32xf32, #tpu.memory_space<vmem>> -> memref<1x32xf32, #tpu.memory_space<vmem>>
      %89 = tpu.memref_slice %arg10[%c2_i32_40] : memref<3x!tpu.dma_semaphore, #tpu.memory_space<semaphore_mem>> -> memref<1x!tpu.dma_semaphore, #tpu.memory_space<semaphore_mem>>
      %90 = tpu.memref_squeeze %89 : memref<1x!tpu.dma_semaphore, #tpu.memory_space<semaphore_mem>> -> memref<!tpu.dma_semaphore, #tpu.memory_space<semaphore_mem>>
      tpu.enqueue_dma source(%87 : memref<1x32xf32, #tpu.memory_space<any>>) target(%88 : memref<1x32xf32, #tpu.memory_space<vmem>>) target_semaphore(%90 : memref<!tpu.dma_semaphore, #tpu.memory_space<semaphore_mem>>)
      %c4_i32_43 = arith.constant 4 : i32
      %91 = arith.muli %66, %c4_i32_43 : i32
      %92 = arith.addi %1, %91 : i32
      %c1_i32_44 = arith.constant 1 : i32
      %93 = arith.addi %92, %c1_i32_44 : i32
      %94 = arith.index_cast %93 : i32 to index
      %95 = memref.load %arg3[%94] : memref<32xi32, #tpu.memory_space<smem>>
      %c8_i32_45 = arith.constant 8 : i32
      %96 = arith.addi %c8_i32_45, %66 : i32
      %c2_i32_46 = arith.constant 2 : i32
      %c0_i32_47 = arith.constant 0 : i32
      %97 = tpu.memref_slice %arg5[%95, %c0_i32_47] : memref<64x32xf32, #tpu.memory_space<any>> -> memref<1x32xf32, #tpu.memory_space<any>>
      %c0_i32_48 = arith.constant 0 : i32
      %98 = tpu.memref_slice %arg9[%96, %c0_i32_48] : memref<32x32xf32, #tpu.memory_space<vmem>> -> memref<1x32xf32, #tpu.memory_space<vmem>>
      %99 = tpu.memref_slice %arg10[%c2_i32_46] : memref<3x!tpu.dma_semaphore, #tpu.memory_space<semaphore_mem>> -> memref<1x!tpu.dma_semaphore, #tpu.memory_space<semaphore_mem>>
      %100 = tpu.memref_squeeze %99 : memref<1x!tpu.dma_semaphore, #tpu.memory_space<semaphore_mem>> -> memref<!tpu.dma_semaphore, #tpu.memory_space<semaphore_mem>>
      tpu.enqueue_dma source(%97 : memref<1x32xf32, #tpu.memory_space<any>>) target(%98 : memref<1x32xf32, #tpu.memory_space<vmem>>) target_semaphore(%100 : memref<!tpu.dma_semaphore, #tpu.memory_space<semaphore_mem>>)
      %c4_i32_49 = arith.constant 4 : i32
      %101 = arith.muli %66, %c4_i32_49 : i32
      %102 = arith.addi %1, %101 : i32
      %c2_i32_50 = arith.constant 2 : i32
      %103 = arith.addi %102, %c2_i32_50 : i32
      %104 = arith.index_cast %103 : i32 to index
      %105 = memref.load %arg3[%104] : memref<32xi32, #tpu.memory_space<smem>>
      %c16_i32 = arith.constant 16 : i32
      %106 = arith.addi %c16_i32, %66 : i32
      %c2_i32_51 = arith.constant 2 : i32
      %c0_i32_52 = arith.constant 0 : i32
      %107 = tpu.memref_slice %arg5[%105, %c0_i32_52] : memref<64x32xf32, #tpu.memory_space<any>> -> memref<1x32xf32, #tpu.memory_space<any>>
      %c0_i32_53 = arith.constant 0 : i32
      %108 = tpu.memref_slice %arg9[%106, %c0_i32_53] : memref<32x32xf32, #tpu.memory_space<vmem>> -> memref<1x32xf32, #tpu.memory_space<vmem>>
      %109 = tpu.memref_slice %arg10[%c2_i32_51] : memref<3x!tpu.dma_semaphore, #tpu.memory_space<semaphore_mem>> -> memref<1x!tpu.dma_semaphore, #tpu.memory_space<semaphore_mem>>
      %110 = tpu.memref_squeeze %109 : memref<1x!tpu.dma_semaphore, #tpu.memory_space<semaphore_mem>> -> memref<!tpu.dma_semaphore, #tpu.memory_space<semaphore_mem>>
      tpu.enqueue_dma source(%107 : memref<1x32xf32, #tpu.memory_space<any>>) target(%108 : memref<1x32xf32, #tpu.memory_space<vmem>>) target_semaphore(%110 : memref<!tpu.dma_semaphore, #tpu.memory_space<semaphore_mem>>)
      %c4_i32_54 = arith.constant 4 : i32
      %111 = arith.muli %66, %c4_i32_54 : i32
      %112 = arith.addi %1, %111 : i32
      %c3_i32 = arith.constant 3 : i32
      %113 = arith.addi %112, %c3_i32 : i32
      %114 = arith.index_cast %113 : i32 to index
      %115 = memref.load %arg3[%114] : memref<32xi32, #tpu.memory_space<smem>>
      %c24_i32 = arith.constant 24 : i32
      %116 = arith.addi %c24_i32, %66 : i32
      %c2_i32_55 = arith.constant 2 : i32
      %c0_i32_56 = arith.constant 0 : i32
      %117 = tpu.memref_slice %arg5[%115, %c0_i32_56] : memref<64x32xf32, #tpu.memory_space<any>> -> memref<1x32xf32, #tpu.memory_space<any>>
      %c0_i32_57 = arith.constant 0 : i32
      %118 = tpu.memref_slice %arg9[%116, %c0_i32_57] : memref<32x32xf32, #tpu.memory_space<vmem>> -> memref<1x32xf32, #tpu.memory_space<vmem>>
      %119 = tpu.memref_slice %arg10[%c2_i32_55] : memref<3x!tpu.dma_semaphore, #tpu.memory_space<semaphore_mem>> -> memref<1x!tpu.dma_semaphore, #tpu.memory_space<semaphore_mem>>
      %120 = tpu.memref_squeeze %119 : memref<1x!tpu.dma_semaphore, #tpu.memory_space<semaphore_mem>> -> memref<!tpu.dma_semaphore, #tpu.memory_space<semaphore_mem>>
      tpu.enqueue_dma source(%117 : memref<1x32xf32, #tpu.memory_space<any>>) target(%118 : memref<1x32xf32, #tpu.memory_space<vmem>>) target_semaphore(%120 : memref<!tpu.dma_semaphore, #tpu.memory_space<semaphore_mem>>)
    }
    %c8_i32_1 = arith.constant 8 : i32
    %cst = arith.constant 0.000000e+00 : f32
    %3 = vector.broadcast %cst : f32 to vector<1x1xf32>
    %c0_i32_2 = arith.constant 0 : i32
    %4 = tpu.memref_slice %arg10[%c0_i32_2] : memref<3x!tpu.dma_semaphore, #tpu.memory_space<semaphore_mem>> -> memref<1x!tpu.dma_semaphore, #tpu.memory_space<semaphore_mem>>
    %5 = tpu.memref_squeeze %4 : memref<1x!tpu.dma_semaphore, #tpu.memory_space<semaphore_mem>> -> memref<!tpu.dma_semaphore, #tpu.memory_space<semaphore_mem>>
    tpu.wait_dma2 semaphore(%5 : memref<!tpu.dma_semaphore, #tpu.memory_space<semaphore_mem>>) src(%arg7 : memref<8x32xf32, #tpu.memory_space<vmem>>) dst(%arg7 : memref<8x32xf32, #tpu.memory_space<vmem>>)
    %c1_i32_3 = arith.constant 1 : i32
    %6 = tpu.memref_slice %arg10[%c1_i32_3] : memref<3x!tpu.dma_semaphore, #tpu.memory_space<semaphore_mem>> -> memref<1x!tpu.dma_semaphore, #tpu.memory_space<semaphore_mem>>
    %7 = tpu.memref_squeeze %6 : memref<1x!tpu.dma_semaphore, #tpu.memory_space<semaphore_mem>> -> memref<!tpu.dma_semaphore, #tpu.memory_space<semaphore_mem>>
    tpu.wait_dma2 semaphore(%7 : memref<!tpu.dma_semaphore, #tpu.memory_space<semaphore_mem>>) src(%arg8 : memref<8x32xf32, #tpu.memory_space<vmem>>) dst(%arg8 : memref<8x32xf32, #tpu.memory_space<vmem>>)
    %c0 = arith.constant 0 : index
    %c0_4 = arith.constant 0 : index
    %8 = vector.load %arg7[%c0, %c0_4] : memref<8x32xf32, #tpu.memory_space<vmem>>, vector<8x32xf32>
    %c0_5 = arith.constant 0 : index
    %c0_6 = arith.constant 0 : index
    %9 = vector.load %arg8[%c0_5, %c0_6] : memref<8x32xf32, #tpu.memory_space<vmem>>, vector<8x32xf32>
    %10 = arith.mulf %9, %8 : vector<8x32xf32>
    %cst_7 = arith.constant dense<0.000000e+00> : vector<8xf32>
    %11 = vector.multi_reduction <add>, %10, %cst_7 [1] : vector<8x32xf32> to vector<8xf32>
    %12 = vector.shape_cast %11 : vector<8xf32> to vector<8x1xf32>
    %cst_8 = arith.constant 0.000000e+00 : f32
    %13 = vector.broadcast %cst_8 : f32 to vector<8x1xf32>
    %14 = arith.minimumf %12, %13 : vector<8x1xf32>
    %15 = math.absf %12 : vector<8x1xf32>
    %cst_9 = arith.constant 0.000000e+00 : f32
    %16 = vector.broadcast %cst_9 : f32 to vector<8x1xf32>
    %17 = arith.subf %16, %15 : vector<8x1xf32>
    %18 = math.exp %17 : vector<8x1xf32>
    %19 = math.log1p %18 : vector<8x1xf32>
    %20 = arith.subf %14, %19 : vector<8x1xf32>
    %cst_10 = arith.constant dense<0.000000e+00> : vector<1xf32>
    %21 = vector.multi_reduction <add>, %20, %cst_10 [0] : vector<8x1xf32> to vector<1xf32>
    %22 = vector.shape_cast %21 : vector<1xf32> to vector<1x1xf32>
    %23 = arith.addf %3, %22 : vector<1x1xf32>
    %c2_i32 = arith.constant 2 : i32
    %24 = tpu.memref_slice %arg10[%c2_i32] : memref<3x!tpu.dma_semaphore, #tpu.memory_space<semaphore_mem>> -> memref<1x!tpu.dma_semaphore, #tpu.memory_space<semaphore_mem>>
    %25 = tpu.memref_squeeze %24 : memref<1x!tpu.dma_semaphore, #tpu.memory_space<semaphore_mem>> -> memref<!tpu.dma_semaphore, #tpu.memory_space<semaphore_mem>>
    tpu.wait_dma2 semaphore(%25 : memref<!tpu.dma_semaphore, #tpu.memory_space<semaphore_mem>>) src(%arg9 : memref<32x32xf32, #tpu.memory_space<vmem>>) dst(%arg9 : memref<32x32xf32, #tpu.memory_space<vmem>>)
    %c0_11 = arith.constant 0 : index
    %c0_12 = arith.constant 0 : index
    %26 = vector.load %arg7[%c0_11, %c0_12] : memref<8x32xf32, #tpu.memory_space<vmem>>, vector<8x32xf32>
    %cst_13 = arith.constant 0.000000e+00 : f32
    %27 = vector.broadcast %cst_13 : f32 to vector<8x1xf32>
    %c0_14 = arith.constant 0 : index
    %c0_15 = arith.constant 0 : index
    %28 = vector.load %arg9[%c0_14, %c0_15] : memref<32x32xf32, #tpu.memory_space<vmem>>, vector<8x32xf32>
    %29 = arith.mulf %28, %26 : vector<8x32xf32>
    %cst_16 = arith.constant dense<0.000000e+00> : vector<8xf32>
    %30 = vector.multi_reduction <add>, %29, %cst_16 [1] : vector<8x32xf32> to vector<8xf32>
    %31 = vector.shape_cast %30 : vector<8xf32> to vector<8x1xf32>
    %32 = arith.addf %27, %31 : vector<8x1xf32>
    %c8 = arith.constant 8 : index
    %c0_17 = arith.constant 0 : index
    %33 = vector.load %arg9[%c8, %c0_17] : memref<32x32xf32, #tpu.memory_space<vmem>>, vector<8x32xf32>
    %34 = arith.mulf %33, %26 : vector<8x32xf32>
    %cst_18 = arith.constant dense<0.000000e+00> : vector<8xf32>
    %35 = vector.multi_reduction <add>, %34, %cst_18 [1] : vector<8x32xf32> to vector<8xf32>
    %36 = vector.shape_cast %35 : vector<8xf32> to vector<8x1xf32>
    %37 = arith.addf %32, %36 : vector<8x1xf32>
    %c16 = arith.constant 16 : index
    %c0_19 = arith.constant 0 : index
    %38 = vector.load %arg9[%c16, %c0_19] : memref<32x32xf32, #tpu.memory_space<vmem>>, vector<8x32xf32>
    %39 = arith.mulf %38, %26 : vector<8x32xf32>
    %cst_20 = arith.constant dense<0.000000e+00> : vector<8xf32>
    %40 = vector.multi_reduction <add>, %39, %cst_20 [1] : vector<8x32xf32> to vector<8xf32>
    %41 = vector.shape_cast %40 : vector<8xf32> to vector<8x1xf32>
    %42 = arith.addf %37, %41 : vector<8x1xf32>
    %c24 = arith.constant 24 : index
    %c0_21 = arith.constant 0 : index
    %43 = vector.load %arg9[%c24, %c0_21] : memref<32x32xf32, #tpu.memory_space<vmem>>, vector<8x32xf32>
    %44 = arith.mulf %43, %26 : vector<8x32xf32>
    %cst_22 = arith.constant dense<0.000000e+00> : vector<8xf32>
    %45 = vector.multi_reduction <add>, %44, %cst_22 [1] : vector<8x32xf32> to vector<8xf32>
    %46 = vector.shape_cast %45 : vector<8xf32> to vector<8x1xf32>
    %47 = arith.addf %42, %46 : vector<8x1xf32>
    %cst_23 = arith.constant 0.000000e+00 : f32
    %48 = vector.broadcast %cst_23 : f32 to vector<8x1xf32>
    %49 = arith.subf %48, %47 : vector<8x1xf32>
    %cst_24 = arith.constant 0.000000e+00 : f32
    %50 = vector.broadcast %cst_24 : f32 to vector<8x1xf32>
    %51 = arith.minimumf %49, %50 : vector<8x1xf32>
    %52 = math.absf %49 : vector<8x1xf32>
    %cst_25 = arith.constant 0.000000e+00 : f32
    %53 = vector.broadcast %cst_25 : f32 to vector<8x1xf32>
    %54 = arith.subf %53, %52 : vector<8x1xf32>
    %55 = math.exp %54 : vector<8x1xf32>
    %56 = math.log1p %55 : vector<8x1xf32>
    %57 = arith.subf %51, %56 : vector<8x1xf32>
    %cst_26 = arith.constant dense<0.000000e+00> : vector<1xf32>
    %58 = vector.multi_reduction <add>, %57, %cst_26 [0] : vector<8x1xf32> to vector<1xf32>
    %59 = vector.shape_cast %58 : vector<1xf32> to vector<1x1xf32>
    %60 = arith.addf %23, %59 : vector<1x1xf32>
    %61 = vector.shape_cast %60 : vector<1x1xf32> to vector<1x1x1xf32>
    %62 = vector.shape_cast %61 : vector<1x1x1xf32> to vector<1x1x1xf32>
    %63 = vector.broadcast %62 : vector<1x1x1xf32> to vector<1x8x128xf32>
    %c0_27 = arith.constant 0 : index
    %c0_28 = arith.constant 0 : index
    %c0_29 = arith.constant 0 : index
    %64 = vector.load %arg6[%c0_27, %c0_28, %c0_29] : memref<1x8x128xf32, #tpu.memory_space<vmem>>, vector<1x8x128xf32>
    tpu.vector_store %arg6[%c0_27, %c0_28, %c0_29], %63 {strides = array<i32>} : memref<1x8x128xf32, #tpu.memory_space<vmem>>, vector<1x8x128xf32>,
    return
  }
  func.func @transform_2(%arg0: i32, %arg1: memref<8xi32, #tpu.memory_space<smem>>, %arg2: memref<8xi32, #tpu.memory_space<smem>>, %arg3: memref<32xi32, #tpu.memory_space<smem>>) -> (i32, i32, i32) {
    %c0_i32 = arith.constant 0 : i32
    %c0_i32_0 = arith.constant 0 : i32
    %c0_i32_1 = arith.constant 0 : i32
    return %arg0, %c0_i32, %c0_i32_0 : i32, i32, i32
  }
}

</mosaic_0001>

<bundles_post_ra>
// kernel: tpu_custom_call.1
= control target key start
LH: loop header
LB: loop body
LE: loop exit
PB: predicated region body
PF: predicated region fallthrough
CT: control target
= control target key end

     0   :  { %s730_s0 = inlined_call_operand.vmem [shape: s32[8], index: 0, kind: input, shape index: {}]   ;;  %s731_s3 = inlined_call_operand.vmem [shape: f32[64,32], index: 3, kind: input, shape index: {}]   ;;  %s732_s4 = inlined_call_operand.vmem [shape: f32[64,32], index: 4, kind: input, shape index: {}]   ;;  %s733_s5 = inlined_call_operand.hbm [shape: f32[1,8,128], index: 5, kind: output, shape index: {}]   ;;  %s734_s1 = inlined_call_operand.vmem [shape: s32[8], index: 1, kind: input, shape index: {}]   ;;  %s735_s2 = inlined_call_operand.vmem [shape: s32[32], index: 2, kind: input, shape index: {}]  }
   0x1   :  { %s10_s20 = sshll.u32 %s730_s0, 4  ;;  %s14_s23 = sshll.u32 %s734_s1, 4  ;;  %s11_s20 = int_to_ptr.vmem [resolvable:$true] %s10_s20  ;;  %s15_s23 = int_to_ptr.vmem [resolvable:$true] %s14_s23 }
   0x2   :  { %s573_s24 = scalar_lea.vmem %s11_s20, 16  ;;  %p578_p1 = scmp.lt.s32.totalorder %s11_s20, %s11_s20 }
   0x3   :  { %p574_p0 = scmp.ne.s32.totalorder %s11_s20, %s573_s24  ;;  %p579_p2 = scmp.lt.s32.totalorder %s573_s24, %s573_s24 }
   0x5   :  { %p580_p3 = por %p579_p2, %p578_p1 }
   0x7   :  { %p581_p4 = pnand %p580_p3, %p574_p0 }
   0x9   :  { %584 = shalt.err (!%p581_p4)  }
   0xa   :  { %s647_s25 = smov [#allocation7]   ;;  %s585_s26 = scalar_lea.vmem %s15_s23, 16 }
   0xb   :  { %13 = dma.vmem_to_smem %s11_s20, 16, %s647_s25, [#allocation6] }
   0xc   :  { %p586_p5 = scmp.ne.s32.totalorder %s15_s23, %s585_s26  ;;  %p590_p6 = scmp.lt.s32.totalorder %s15_s23, %s15_s23 }
   0xd   :  { %p591_p7 = scmp.lt.s32.totalorder %s585_s26, %s585_s26 }
   0xf   :  { %p592_p8 = por %p591_p7, %p590_p6 }
  0x11   :  { %p593_p9 = pnand %p592_p8, %p586_p5 }
  0x13   :  { %596 = shalt.err (!%p593_p9)  }
  0x14   :  { %s648_s0 = smov [#allocation8]   ;;  %s18_s28 = sshll.u32 %s735_s2, 4  ;;  %s19_s28 = int_to_ptr.vmem [resolvable:$true] %s18_s28 }
  0x15   :  { %17 = dma.vmem_to_smem %s15_s23, 16, %s648_s0, [#allocation6] }
  0x16   :  { %s597_s29 = scalar_lea.vmem %s19_s28, 16  ;;  %p602_p11 = scmp.lt.s32.totalorder %s19_s28, %s19_s28 }
  0x17   :  { %p598_p10 = scmp.ne.s32.totalorder %s19_s28, %s597_s29  ;;  %p603_p12 = scmp.lt.s32.totalorder %s597_s29, %s597_s29 }
  0x19   :  { %p604_p13 = por %p603_p12, %p602_p11 }
  0x1b   :  { %p605_p0 = pnand %p604_p13, %p598_p10 }
  0x1d   :  { %608 = shalt.err (!%p605_p0)  }
  0x1e   :  { %s649_s30 = smov [#allocation9]  }
  0x1f   :  { %21 = dma.vmem_to_smem %s19_s28, 16, %s649_s30, [#allocation6] }
  0x20   :  { %633 = dma.done.wait [#allocation6], 48 }
  0x21   :  { %634 = vsyncadd [#allocation6], 4294967248 }
  0x22   :  { %23 = sfence }
  0x23   :  { %24 = vsyncpa [#allocation11], 0  ;;  %s690_s6 = smov 0  }
  0x24 LB: > { %s34_s2 = sld [smem:[#allocation7 + %s645_s6]]  ;;  %s36_s10 = scalar_lea.vmem [#allocation2], %s645_s6  ;;  %s645_s6 = sphi %s690_s6, %s32_s6  }
  0x2a   : > { %s35_s9 = scalar_lea.vmem %s731_s3, %s34_s2 }
  0x2b   : > { %v55_v0 = vld [vmem:[%s35_s9] sm:$0x1] }
  0x2c   : > { %56 = vst [vmem:[%s36_s10] sm:$0x1] %v55_v0 }
  0x2d   : > { %82 = vsyncadd [#allocation5], 16  ;;  %s83_s11 = sld [smem:[#allocation8 + %s645_s6]]  ;;  %s85_s15 = scalar_lea.vmem [#allocation3], %s645_s6 }
  0x33   : > { %s84_s14 = scalar_lea.vmem %s732_s4, %s83_s11 }
  0x34   : > { %v105_v1 = vld [vmem:[%s84_s14] sm:$0x1] }
  0x35   : > { %106 = vst [vmem:[%s85_s15] sm:$0x1] %v105_v1 }
  0x36   : > { %132 = vsyncadd [#allocation5 + $0x1], 16  ;;  %s543_s16 = sshll.u32 %s645_s6, 2  ;;  %s137_s21 = scalar_lea.vmem [#allocation4], %s645_s6 }
  0x37   : > { %s135_s17 = sld [smem:[#allocation9 + %s543_s16]] }
  0x3d   : > { %s136_s20 = scalar_lea.vmem %s732_s4, %s135_s17 }
  0x3e   : > { %v157_v2 = vld [vmem:[%s136_s20] sm:$0x1] }
  0x3f   : > { %158 = vst [vmem:[%s137_s21] sm:$0x1] %v157_v2 }
  0x40   : > { %184 = vsyncadd [#allocation5 + $0x2], 16  ;;  %s185_s22 = sadd.s32 1, %s543_s16 }
  0x41   : > { %s186_s23 = sld [smem:[#allocation9 + %s185_s22]] }
  0x47   : > { %s188_s26 = scalar_lea.vmem %s732_s4, %s186_s23 }
  0x48   : > { %v208_v3 = vld [vmem:[%s188_s26] sm:$0x1] }
  0x49   : > { %545 = vst [vmem:[%s137_s21 + $0x8] sm:$0x1] %v208_v3 }
  0x4a   : > { %235 = vsyncadd [#allocation5 + $0x2], 16  ;;  %s236_s0 = sadd.s32 2, %s543_s16 }
  0x4b   : > { %s237_s1 = sld [smem:[#allocation9 + %s236_s0]] }
  0x51   : > { %s239_s29 = scalar_lea.vmem %s732_s4, %s237_s1 }
  0x52   : > { %v259_v4 = vld [vmem:[%s239_s29] sm:$0x1] }
  0x53   : > { %547 = vst [vmem:[%s137_s21 + $0x10] sm:$0x1] %v259_v4 }
  0x54   : > { %286 = vsyncadd [#allocation5 + $0x2], 16  ;;  %s287_s30 = sadd.s32 3, %s543_s16 }
  0x55   : > { %s288_s2 = sld [smem:[#allocation9 + %s287_s30]] }
  0x5b   : > { %s290_s9 = scalar_lea.vmem %s732_s4, %s288_s2 }
  0x5c   : > { %v310_v5 = vld [vmem:[%s290_s9] sm:$0x1] }
  0x5d   : > { %549 = vst [vmem:[%s137_s21 + $0x18] sm:$0x1] %v310_v5 }
  0x5e   : > { %337 = vsyncadd [#allocation5 + $0x2], 16  ;;  %s32_s6 = sadd.s32 1, %s645_s6  }
  0x5f   : > { %p29_p1 = scmp.ge.s32.totalorder %s32_s6, 8  }
  0x61   :  { %31 = sbr.rel (!%p29_p1) target bundleno = 36 (0x24), region = 285 }
  0x66   :  { %635 = dma.done.wait [#allocation5], 128 }
  0x67   :  { %636 = vsyncadd [#allocation5], 4294967168 }
  0x68   :  { %637 = dma.done.wait [#allocation5 + $0x1], 128 }
  0x69   :  { %638 = vsyncadd [#allocation5 + $0x1], 4294967168  ;;  %v344_v6 = vld [vmem:[#allocation2] sm:$0xff]  ;;  %v345_v7 = vld [vmem:[#allocation3] sm:$0xff]  ;;  %vm347_vm0 = vcmask 261120  }
  0x6a   :  { %v346_v8 = vmul.f32 %v345_v7, %v344_v6 }
  0x6c   :  { %v348_v9 = vsel %vm347_vm0, %v346_v8, 0.0 }
  0x6d   :  { %349 = vadd.xlane.f32.xlu0 %v348_v9 }
  0xf6   :  { %v350_v10 = vpop.xlane.xlu0 %349 }
  0xf7   :  { %v352_v11 = vand.u32 2147483647, %v350_v10  ;;  %v351_v22 = vmin.f32 %v350_v10, 0.0 }
  0xf9   :  { %v353_v12 = vsub.f32 0.0, %v352_v11 }
  0xfb   :  { %v354_v13 = vmul.f32 1.442695, %v353_v12 }
  0xfd   :  { %565 = vpow2.f32 %v354_v13 }
 0x10a   :  { %v566_v14 = vpop.eup %565 }
 0x10b   :  { %v356_v15 = vadd.f32 1.0, %v566_v14  ;;  %v359_v16 = vmul.f32 -0.5, %v566_v14  ;;  %v362_v18 = vand.u32 2147483647, %v566_v14 }
 0x10d   :  { %567 = vlog2.f32 %v356_v15  ;;  %v360_v17 = vadd.f32 1.0, %v359_v16  ;;  %vm363_vm1 = vcmp.lt.f32.partialorder %v362_v18, 0.0004427343 }
 0x10f   :  { %v361_v21 = vmul.f32 %v566_v14, %v360_v17 }
 0x11a   :  { %v568_v19 = vpop.eup %567 }
 0x11b   :  { %v358_v20 = vmul.f32 0.6931472, %v568_v19 }
 0x11d   :  { %v364_v23 = vsel %vm363_vm1, %v361_v21, %v358_v20 }
 0x11e   :  { %v365_v24 = vsub.f32 %v351_v22, %v364_v23 }
 0x120   :  { %v366_v25 = vrot.slane %v365_v24, 4 }
 0x122   :  { %v367_v26 = vadd.f32 %v366_v25, %v365_v24 }
 0x124   :  { %v368_v27 = vrot.slane %v367_v26, 2 }
 0x126   :  { %v369_v28 = vadd.f32 %v368_v27, %v367_v26 }
 0x128   :  { %v370_v29 = vrot.slane %v369_v28, 1 }
 0x12a   :  { %v371_v30 = vadd.f32 %v370_v29, %v369_v28 }
 0x12b   :  { %639 = dma.done.wait [#allocation5 + $0x2], 512 }
 0x12c   :  { %640 = vsyncadd [#allocation5 + $0x2], 4294966784  ;;  %v377_v31 = vld [vmem:[#allocation2] sm:$0xff]  ;;  %v378_v32 = vld [vmem:[#allocation4] sm:$0xff]  ;;  %s650_s3 = smov [#allocation10]  }
 0x12d   :  { %v390_v33 = vld [vmem:[#allocation4 + $0x10] sm:$0xff]  ;;  %v379_v34 = vmul.f32 %v378_v32, %v377_v31  ;;  %v384_v36 = vld [vmem:[#allocation4 + $0x8] sm:$0xff]  ;;  %v396_v37 = vld [vmem:[#allocation4 + $0x18] sm:$0xff]  ;;  %s432_s4 = sshll.u32 %s650_s3, 4  ;;  %s433_s4 = int_to_ptr.vmem [resolvable:$true] %s432_s4 }
 0x12e   :  { %v391_v35 = vmul.f32 %v390_v33, %v377_v31  ;;  %v385_v38 = vmul.f32 %v384_v36, %v377_v31  ;;  %v397_v39 = vmul.f32 %v396_v37, %v377_v31  ;;  %s609_s6 = scalar_lea.vmem %s433_s4, 128  ;;  %p614_p3 = scmp.lt.s32.totalorder %s433_s4, %s433_s4 }
 0x12f   :  { %v380_v40 = vsel %vm347_vm0, %v379_v34, 0.0  ;;  %p610_p2 = scmp.ne.s32.totalorder %s433_s4, %s609_s6  ;;  %p615_p4 = scmp.lt.s32.totalorder %s609_s6, %s609_s6 }
 0x130   :  { %v392_v41 = vsel %vm347_vm0, %v391_v35, 0.0  ;;  %381 = vadd.xlane.f32.xlu0 %v380_v40  ;;  %v386_v42 = vsel %vm347_vm0, %v385_v38, 0.0  ;;  %v398_v43 = vsel %vm347_vm0, %v397_v39, 0.0 }
 0x131   :  { %393 = vadd.xlane.f32.xlu1 %v392_v41  ;;  %p616_p5 = por %p615_p4, %p614_p3 }
 0x133   :  { %p617_p6 = pnand %p616_p5, %p610_p2 }
 0x134   :  { %387 = vadd.xlane.f32.xlu0 %v386_v42 }
 0x135   :  { %399 = vadd.xlane.f32.xlu1 %v398_v43 }
 0x1b9   :  { %v382_v44 = vpop.xlane.xlu0 %381 }
 0x1ba   :  { %v394_v45 = vpop.xlane.xlu1 %393 }
 0x1bd   :  { %v388_v46 = vpop.xlane.xlu0 %387 }
 0x1be   :  { %v389_v47 = vadd.f32 %v388_v46, %v382_v44  ;;  %v400_v48 = vpop.xlane.xlu1 %399 }
 0x1c0   :  { %v395_v49 = vadd.f32 %v394_v45, %v389_v47 }
 0x1c2   :  { %v401_v50 = vadd.f32 %v400_v48, %v395_v49 }
 0x1c4   :  { %v402_v51 = vsub.f32 0.0, %v401_v50 }
 0x1c6   :  { %v404_v52 = vand.u32 2147483647, %v402_v51  ;;  %v403_v63 = vmin.f32 %v402_v51, 0.0 }
 0x1c8   :  { %v405_v53 = vsub.f32 0.0, %v404_v52 }
 0x1ca   :  { %v406_v54 = vmul.f32 1.442695, %v405_v53 }
 0x1cc   :  { %569 = vpow2.f32 %v406_v54 }
 0x1d9   :  { %v570_v55 = vpop.eup %569 }
 0x1da   :  { %v408_v56 = vadd.f32 1.0, %v570_v55  ;;  %v411_v57 = vmul.f32 -0.5, %v570_v55  ;;  %v414_v59 = vand.u32 2147483647, %v570_v55 }
 0x1dc   :  { %571 = vlog2.f32 %v408_v56  ;;  %v412_v58 = vadd.f32 1.0, %v411_v57  ;;  %vm415_vm2 = vcmp.lt.f32.partialorder %v414_v59, 0.0004427343 }
 0x1de   :  { %v413_v62 = vmul.f32 %v570_v55, %v412_v58 }
 0x1e9   :  { %v572_v60 = vpop.eup %571 }
 0x1ea   :  { %v410_v61 = vmul.f32 0.6931472, %v572_v60 }
 0x1ec   :  { %v416_v0 = vsel %vm415_vm2, %v413_v62, %v410_v61 }
 0x1ed   :  { %v417_v1 = vsub.f32 %v403_v63, %v416_v0 }
 0x1ef   :  { %v418_v2 = vrot.slane %v417_v1, 4 }
 0x1f1   :  { %v419_v3 = vadd.f32 %v418_v2, %v417_v1 }
 0x1f3   :  { %v420_v4 = vrot.slane %v419_v3, 2 }
 0x1f5   :  { %v421_v5 = vadd.f32 %v420_v4, %v419_v3 }
 0x1f7   :  { %v422_v6 = vrot.slane %v421_v5, 1 }
 0x1f9   :  { %v423_v7 = vadd.f32 %v422_v6, %v421_v5 }
 0x1fb   :  { %v424_v8 = vadd.f32 %v423_v7, %v371_v30 }
 0x1fd   :  { %425 = vst [vmem:[#allocation10] sm:$0xff] %v424_v8 }
 0x1fe   :  { %620 = shalt.err (!%p617_p6)
}
 0x1ff   :  { %435 = dma.vmem_to_hbm [thread:$0]  %s433_s4, 128, %s733_s5, [#allocation11]  }
 0x200   :  { %641 = dma.done.wait [#allocation11], 128  }
 0x201   :  { %642 = vsyncadd [#allocation11], 4294967168 }
 0x202   :  { %439 = vsyncpa [#allocation11], 1 }
 0x203   :  { %440 = vsyncmov [#allocation5] }
 0x206   :  { %s441_s12 = vpop.sfrf %440 }
 0x207   :  { %p550_p7 = scmp.ne.s32.totalorder %s441_s12, 0 }
 0x209   :  { %445 = shalt.err (%p550_p7)  }
 0x20a   :  { %447 = vsyncmov [#allocation5 + $0x1] }
 0x20d   :  { %s448_s13 = vpop.sfrf %447 }
 0x20e   :  { %p551_p8 = scmp.ne.s32.totalorder %s448_s13, 0 }
 0x210   :  { %452 = shalt.err (%p551_p8)  }
 0x211   :  { %454 = vsyncmov [#allocation5 + $0x2] }
 0x214   :  { %s455_s14 = vpop.sfrf %454 }
 0x215   :  { %p552_p9 = scmp.ne.s32.totalorder %s455_s14, 0 }
 0x217   :  { %459 = shalt.err (%p552_p9)  }

</bundles_post_ra>
